<compile_context>
chip_gen: v7x
topology: tpu7x:2x2x1
jax: 0.10.0
libtpu: 0.0.40
codegen_flags: <defaults>
</compile_context>

<pallas_src>
import functools
import math

import jax
import jax.numpy as jnp
from jax import lax
from jax.experimental import pallas as pl
from jax.experimental.pallas import tpu as pltpu


# -----------------------------------------------------------------------------
# Kernel 1: fused sigmoid-focal-loss sum + cardinality, single pass over logits
#   layout (B, C, Q): Q on lanes, C on sublanes
#   grid = (batch_groups, q_splits), both "parallel"; one reduce per program
# -----------------------------------------------------------------------------
def _cls_kernel(alpha, gamma, x_ref, tc_ref, focal_ref, card_ref):
    x = x_ref[...].astype(jnp.float32)          # (bb, C, tq) logits
    tc = tc_ref[...]                            # (bb, 1, tq) int32 target class
    C = x.shape[1]

    cls_iota = lax.broadcasted_iota(jnp.int32, x.shape, dimension=1)
    match = cls_iota == tc                      # boolean one-hot, built in-vreg

    # ---- sigmoid focal loss (select-based, gamma==2 fast path) ----
    p = jax.nn.sigmoid(x)
    # log(1+exp(-|x|)) recovered from the sigmoid: == -log(max(p, 1-p))
    log_term = jnp.log(jnp.maximum(p, 1.0 - p))
    ce = jnp.maximum(x, 0.0) - jnp.where(match, x, 0.0) - log_term
    one_m_pt = jnp.where(match, 1.0 - p, p)     # == 1 - p_t
    if gamma == 2.0:
        mod = one_m_pt * one_m_pt               # no pow
    else:
        mod = one_m_pt ** gamma
    a_t = jnp.where(match, alpha, 1.0 - alpha)
    loss = a_t * ce * mod
    fsum = jnp.sum(jnp.sum(loss, axis=2, keepdims=True), axis=1, keepdims=True)
    fsum = jnp.sum(fsum, axis=0, keepdims=True)           # (1, 1, 1)
    focal_ref[...] = fsum[None]                           # (1, 1, 1, 1)

    # ---- cardinality: argmax(class) != C-1  <=>  max(x[:C-1]) >= x[C-1] ----
    neg = jnp.float32(-1e30)
    others_max = jnp.max(jnp.where(cls_iota < C - 1, x, neg), axis=1)  # (bb, tq)
    last = x[:, C - 1, :]                                              # (bb, tq)
    not_empty = (others_max >= last).astype(jnp.float32)
    card_b = jnp.sum(not_empty, axis=1, keepdims=True)                 # (bb, 1)
    card_ref[...] = card_b[None, None]                                 # (1,1,bb,1)


def _cls_tiles(B, Q, C, budget_elems=1 << 19):
    """Pick (batch rows per block, lane tile, #lane splits).

    Lane tiles must be a multiple of 128 or the full Q.  Q is only split when
    that keeps two parallel programs (v7x megacore); the batch slab is the
    largest divisor of B that keeps f32 temporaries well under the VMEM limit
    (budgeted against v7x's 64 MiB, i.e. the 32 MiB default scoped limit).
    """
    gq = 2 if (Q % 256 == 0) else 1
    tq = Q // gq
    bb = 1
    for cand in range(B, 0, -1):
        if B % cand == 0 and cand * C * tq <= budget_elems:
            bb = cand
            break
    return bb, tq, gq


def focal_and_cardinality(logits, target_classes, alpha=0.25, gamma=2.0):
    """One pass over pred_logits.  Returns (sum focal loss, card_pred[B])."""
    B, Q, C = logits.shape
    # lane-dense layout: Q -> lanes, C -> sublanes (no wrapper-side dtype cast)
    xt = jnp.transpose(logits, (0, 2, 1))                       # (B, C, Q)
    tc = target_classes.astype(jnp.int32).reshape(B, 1, Q)
    bb, tq, gq = _cls_tiles(B, Q, C)
    gb = B // bb
    kernel = functools.partial(_cls_kernel, float(alpha), float(gamma))
    focal, card = pl.pallas_call(
        kernel,
        out_shape=(jax.ShapeDtypeStruct((gb, gq, 1, 1), jnp.float32),
                   jax.ShapeDtypeStruct((gb, gq, bb, 1), jnp.float32)),
        grid=(gb, gq),
        in_specs=[pl.BlockSpec((bb, C, tq), lambda b, q: (b, 0, q)),
                  pl.BlockSpec((bb, 1, tq), lambda b, q: (b, 0, q))],
        out_specs=(pl.BlockSpec((1, 1, 1, 1), lambda b, q: (b, q, 0, 0)),
                   pl.BlockSpec((1, 1, bb, 1), lambda b, q: (b, q, 0, 0))),
        compiler_params=pltpu.CompilerParams(
            dimension_semantics=("parallel", "parallel")),
    )(xt, tc)                            # logits passed in native dtype (bf16 ok)
    focal_sum = jnp.sum(focal)
    card_pred = jnp.sum(card, axis=(1, 3)).reshape(-1)          # (B,)
    return focal_sum, card_pred


# -----------------------------------------------------------------------------
# Kernel 2: box losses for BOTH (pred, pre) problems in one call.
#   four aligned slabs (2, 2, Npad): src/tgt centers [cx,cy], sizes [w,h]
#   outputs: l1 sums (2,1,1) and sum(1 - CIoU) (2,1,1)
# -----------------------------------------------------------------------------
_PAD_BOX = (0.5, 0.5, 1.0, 1.0)   # neutral box: src==tgt pads contribute 0


def _sum12(x):
    # sequential lane-then-sublane reduction (keepdims) -> (P, 1, 1)
    return jnp.sum(jnp.sum(x, axis=2, keepdims=True), axis=1, keepdims=True)


def _atan_pos(z):
    """arctan for z >= 0: range reduction + odd minimax polynomial on [0,1]."""
    big = z > 1.0
    t = jnp.where(big, pl.reciprocal(z, approx=True), z)
    t2 = t * t
    poly = t * (0.99986614
                + t2 * (-0.33029950
                        + t2 * (0.18014100
                                + t2 * (-0.08513300 + 0.02083510 * t2))))
    return jnp.where(big, (math.pi / 2.0) - poly, poly)


def _box_loss_kernel(n_valid, sc_ref, ss_ref, tc_ref, ts_ref, l1_ref, giou_ref):
    eps = 1e-7
    sc = sc_ref[...]   # (2, 2, Np) src centers [cx, cy]
    ss = ss_ref[...]   # (2, 2, Np) src sizes   [w,  h ]
    tc = tc_ref[...]   # (2, 2, Np) tgt centers
    ts = ts_ref[...]   # (2, 2, Np) tgt sizes

    dc = sc - tc
    dsz = ss - ts
    # padded lanes hold identical src/tgt boxes -> exact zeros; no mask needed
    l1_ref[...] = _sum12(jnp.abs(dc)) + _sum12(jnp.abs(dsz))

    # corner math on aligned slabs (same sublane offsets everywhere)
    s_min = sc - 0.5 * ss
    s_max = sc + 0.5 * ss
    t_min = tc - 0.5 * ts
    t_max = tc + 0.5 * ts

    lo = jnp.maximum(s_min, t_min)
    hi = jnp.minimum(s_max, t_max)
    iwh = jnp.maximum(hi - lo, 0.0)
    inter = iwh[:, 0:1, :] * iwh[:, 1:2, :]                       # (2,1,Np)
    area_s = ss[:, 0:1, :] * ss[:, 1:2, :]
    area_t = ts[:, 0:1, :] * ts[:, 1:2, :]
    union = area_s + area_t - inter + eps
    iou = inter * pl.reciprocal(union, approx=True)

    cwh = jnp.maximum(s_max, t_max) - jnp.minimum(s_min, t_min)
    c2 = cwh[:, 0:1, :] * cwh[:, 0:1, :] + cwh[:, 1:2, :] * cwh[:, 1:2, :] + eps
    rho2 = dc[:, 0:1, :] * dc[:, 0:1, :] + dc[:, 1:2, :] * dc[:, 1:2, :]

    # aspect-ratio term; arctan computed in-kernel (w, h >= 0)
    atan_s = _atan_pos(ss[:, 0:1, :] * pl.reciprocal(ss[:, 1:2, :] + eps, approx=True))
    atan_t = _atan_pos(ts[:, 0:1, :] * pl.reciprocal(ts[:, 1:2, :] + eps, approx=True))
    da = atan_t - atan_s
    v = (4.0 / (math.pi ** 2)) * da * da
    a = v * pl.reciprocal(1.0 - iou + v + eps, approx=True)
    ciou = iou - rho2 * pl.reciprocal(c2, approx=True) - a * v

    one_m_ciou = 1.0 - ciou                                       # (2, 1, Np)
    lane = lax.broadcasted_iota(jnp.int32, one_m_ciou.shape, dimension=2)
    one_m_ciou = jnp.where(lane < n_valid, one_m_ciou, 0.0)       # drop pads
    giou_ref[...] = _sum12(one_m_ciou)


def _pack_cs(boxes, n_pad):
    """(N,4) cxcywh -> (centers (2,Np), sizes (2,Np)), padded with neutral boxes."""
    b = boxes.astype(jnp.float32)
    n = b.shape[0]
    if n_pad > n:
        pad = jnp.broadcast_to(jnp.asarray(_PAD_BOX, jnp.float32), (n_pad - n, 4))
        b = jnp.concatenate([b, pad], axis=0)
    bt = b.T                                   # (4, Np)
    return bt[0:2], bt[2:4]


def box_l1_ciou_sums_pair(src, tgt, pre_src, pre_tgt):
    """All boxes (N, 4) cxcywh.  Returns (l1_sums[2], sum(1-ciou)[2]) for
    problem 0 = (pred, target_boxes), problem 1 = (pre, target_motions)."""
    n = src.shape[0]
    n_pad = max(128, -(-n // 128) * 128)       # lane-pad to a multiple of 128

    sc0, ss0 = _pack_cs(src, n_pad)
    tc0, ts0 = _pack_cs(tgt, n_pad)
    sc1, ss1 = _pack_cs(pre_src, n_pad)
    tc1, ts1 = _pack_cs(pre_tgt, n_pad)
    src_c = jnp.stack([sc0, sc1], axis=0)      # (2, 2, Np) aligned slabs
    src_s = jnp.stack([ss0, ss1], axis=0)
    tgt_c = jnp.stack([tc0, tc1], axis=0)
    tgt_s = jnp.stack([ts0, ts1], axis=0)

    l1, giou = pl.pallas_call(
        functools.partial(_box_loss_kernel, n),
        out_shape=(jax.ShapeDtypeStruct((2, 1, 1), jnp.float32),
                   jax.ShapeDtypeStruct((2, 1, 1), jnp.float32)),
        in_specs=[pl.BlockSpec(memory_space=pltpu.MemorySpace.VMEM)] * 4,
        out_specs=(pl.BlockSpec(memory_space=pltpu.MemorySpace.VMEM),
                   pl.BlockSpec(memory_space=pltpu.MemorySpace.VMEM)),
    )(src_c, src_s, tgt_c, tgt_s)
    return l1[:, 0, 0], giou[:, 0, 0]


# -----------------------------------------------------------------------------
# SetCriterion (forward semantics of the PyTorch module)
# -----------------------------------------------------------------------------
class SetCriterionPallas:
    def __init__(self, num_classes, weight_dict=None,
                 losses=("labels", "cardinality", "boxes"), focal_alpha=0.25):
        self.num_classes = num_classes
        self.weight_dict = weight_dict or {}
        self.losses = losses
        self.focal_alpha = focal_alpha

    # TODO(synk): the Hungarian matcher (scipy linear_sum_assignment) has no
    # clean Pallas equivalent; a deterministic identity matching is used here.
    def _matcher(self, outputs, targets):
        return [(jnp.arange(t['boxes'].shape[0], dtype=jnp.int32),
                 jnp.arange(t['boxes'].shape[0], dtype=jnp.int32))
                for t in targets]

    def loss_labels(self, outputs, targets, indices, num_boxes, shared):
        denom = num_boxes if num_boxes != 0 else 1.0
        # sigmoid_focal_loss(...) * Q  ==  sum(loss) / num_boxes
        return {'loss_ce': shared['focal_sum'] / denom}

    def loss_cardinality(self, outputs, targets, indices, num_boxes, shared):
        card_pred = shared['card_pred']                      # (B,)
        tgt_lengths = jnp.asarray([t['labels'].shape[0] for t in targets],
                                  dtype=jnp.float32)
        return {'cardinality_error': jnp.mean(jnp.abs(card_pred - tgt_lengths))}

    def loss_boxes(self, outputs, targets, indices, num_boxes, shared):
        if num_boxes == 0:
            z = jnp.zeros((), jnp.float32)
            return {'loss_bbox': z, 'loss_giou': z,
                    'pre_loss_bbox': z, 'pre_loss_giou': z}
        # NOTE: the reference zips targets[1:] with indices because
        # refine_targets carries a leading sentinel entry; here the target list
        # is already aligned 1:1 with the batch, so we zip directly.
        src_boxes = jnp.concatenate(
            [outputs['pred_boxes'][b][src] for b, (src, _) in enumerate(indices)], 0)
        pre_src_boxes = jnp.concatenate(
            [outputs['pre_boxes'][b][src] for b, (src, _) in enumerate(indices)], 0)
        target_boxes = jnp.concatenate(
            [t['boxes'][tgt] for t, (_, tgt) in zip(targets, indices)], 0)
        target_motions = jnp.concatenate(
            [t['motion'][tgt] for t, (_, tgt) in zip(targets, indices)], 0)

        l1_sums, giou_sums = box_l1_ciou_sums_pair(
            src_boxes, target_boxes, pre_src_boxes, target_motions)
        return {
            'loss_bbox': l1_sums[0] / num_boxes,
            'loss_giou': giou_sums[0] / num_boxes,
            'pre_loss_bbox': l1_sums[1] / num_boxes,
            'pre_loss_giou': giou_sums[1] / num_boxes,
        }

    # TODO(synk): loss_masks (nested_tensor + bilinear interpolate), patch_*
    # losses and aux/enc output branches are not reproduced here.

    def get_loss(self, loss, outputs, targets, indices, num_boxes, shared):
        loss_map = {'labels': self.loss_labels,
                    'cardinality': self.loss_cardinality,
                    'boxes': self.loss_boxes}
        return loss_map[loss](outputs, targets, indices, num_boxes, shared)

    def forward(self, outputs, refine_targets):
        losses = {}
        indices = self._matcher(outputs, refine_targets)
        num_boxes = sum(int(t['boxes'].shape[0]) for t in refine_targets
                        if 'boxes' in t)
        num_boxes = max(float(num_boxes), 0.0)
        # TODO(synk): distributed all_reduce / world-size normalization skipped.

        # --- shared single pass over pred_logits (focal sum + cardinality) ---
        shared = {}
        if 'labels' in self.losses or 'cardinality' in self.losses:
            logits = outputs['pred_logits']
            B, Q, C = logits.shape
            if num_boxes == 0:
                # all-zero one-hot target (no class index matches)
                target_classes = jnp.full((B, Q), C, dtype=jnp.int32)
            else:
                target_classes = jnp.full((B, Q), self.num_classes,
                                          dtype=jnp.int32)
                for b, (src, _) in enumerate(indices):
                    # matched queries get class 1 (as in the reference module)
                    target_classes = target_classes.at[b, src].set(1)
            focal_sum, card_pred = focal_and_cardinality(
                logits, target_classes, alpha=self.focal_alpha, gamma=2.0)
            shared['focal_sum'] = focal_sum
            shared['card_pred'] = card_pred

        for loss in self.losses:
            losses.update(self.get_loss(loss, outputs, refine_targets, indices,
                                        num_boxes, shared))
        return losses


# -----------------------------------------------------------------------------
if __name__ == "__main__":
    key = jax.random.PRNGKey(0)
    B, Q, C = 2, 8, 3          # batch, queries, classes (num_classes == C)
    n_per = [3, 3]

    k1, k2, k3, k4 = jax.random.split(key, 4)
    pred_logits = jax.random.normal(k1, (B, Q, C), jnp.float32)
    pred_boxes = jax.nn.sigmoid(jax.random.normal(k2, (B, Q, 4), jnp.float32))
    pre_boxes = jax.nn.sigmoid(jax.random.normal(k3, (B, Q, 4), jnp.float32))

    targets = []
    tk = k4
    for b in range(B):
        tk, ka, kb, kc, kd = jax.random.split(tk, 5)
        cxcy = 0.2 + 0.6 * jax.random.uniform(ka, (n_per[b], 2))
        wh = 0.1 + 0.3 * jax.random.uniform(kb, (n_per[b], 2))
        boxes = jnp.concatenate([cxcy, wh], -1)
        mcxcy = 0.2 + 0.6 * jax.random.uniform(kc, (n_per[b], 2))
        mwh = 0.1 + 0.3 * jax.random.uniform(kd, (n_per[b], 2))
        motion = jnp.concatenate([mcxcy, mwh], -1)
        labels = jnp.ones((n_per[b],), jnp.int32)
        targets.append({'boxes': boxes, 'motion': motion,
                        'labels': labels, 'patch_area': boxes})

    outputs = {'pred_logits': pred_logits,
               'pred_boxes': pred_boxes,
               'pre_boxes': pre_boxes}

    criterion = SetCriterionPallas(num_classes=C, focal_alpha=0.25)
    losses = criterion.forward(outputs, targets)
    losses = {k: jax.block_until_ready(v) for k, v in losses.items()}
    # touch every value to make sure computation completed and is finite-typed
    _ = {k: float(v) for k, v in losses.items()}
    print("KERNEL_OK")
</pallas_src>

<mosaic_0001>
module attributes {stable_mosaic.version = 11 : i64} {
  func.func @_cls_kernel(%arg0: i32, %arg1: i32, %arg2: memref<2x3x8xf32, #tpu.memory_space<vmem>>, %arg3: memref<2x1x8xi32, #tpu.memory_space<vmem>>, %arg4: memref<1x1x1x1xf32, #tpu.memory_space<vmem>>, %arg5: memref<1x1x2x1xf32, #tpu.memory_space<vmem>>) attributes {dimension_semantics = [#tpu.dimension_semantics<parallel>, #tpu.dimension_semantics<parallel>], iteration_bounds = array<i64: 1, 1>, scalar_prefetch = 0 : i64, scratch_operands = 0 : i64, tpu.core_type = #tpu.core_type<tc>, window_params = [{transform_indices = @transform_0, window_bounds = array<i64: 2, 3, 8>}, {transform_indices = @transform_1, window_bounds = array<i64: 2, 1, 8>}, {transform_indices = @transform_2, window_bounds = array<i64: 1, 1, 1, 1>}, {transform_indices = @transform_3, window_bounds = array<i64: 1, 1, 2, 1>}]} {
    %c0 = arith.constant 0 : index
    %c0_0 = arith.constant 0 : index
    %c0_1 = arith.constant 0 : index
    %0 = vector.load %arg2[%c0, %c0_0, %c0_1] : memref<2x3x8xf32, #tpu.memory_space<vmem>>, vector<2x3x8xf32>
    %c0_2 = arith.constant 0 : index
    %c0_3 = arith.constant 0 : index
    %c0_4 = arith.constant 0 : index
    %1 = vector.load %arg3[%c0_2, %c0_3, %c0_4] : memref<2x1x8xi32, #tpu.memory_space<vmem>>, vector<2x1x8xi32>
    %2 = tpu.iota {dimensions = array<i32: 1>} : vector<2x3x8xi32>
    %3 = vector.broadcast %1 : vector<2x1x8xi32> to vector<2x3x8xi32>
    %4 = arith.cmpi eq, %2, %3 : vector<2x3x8xi32>
    %5 = arith.negf %0 : vector<2x3x8xf32>
    %6 = math.exp %5 : vector<2x3x8xf32>
    %cst = arith.constant 1.000000e+00 : f32
    %7 = vector.broadcast %cst : f32 to vector<2x3x8xf32>
    %8 = arith.addf %7, %6 : vector<2x3x8xf32>
    %9 = arith.divf %7, %8 : vector<2x3x8xf32>
    %cst_5 = arith.constant 1.000000e+00 : f32
    %10 = vector.broadcast %cst_5 : f32 to vector<2x3x8xf32>
    %11 = arith.subf %10, %9 : vector<2x3x8xf32>
    %12 = arith.maximumf %9, %11 : vector<2x3x8xf32>
    %13 = math.log %12 : vector<2x3x8xf32>
    %cst_6 = arith.constant 0.000000e+00 : f32
    %14 = vector.broadcast %cst_6 : f32 to vector<2x3x8xf32>
    %15 = arith.maximumf %0, %14 : vector<2x3x8xf32>
    %cst_7 = arith.constant 0.000000e+00 : f32
    %16 = vector.broadcast %cst_7 : f32 to vector<2x3x8xf32>
    %17 = arith.select %4, %0, %16 : vector<2x3x8xi1>, vector<2x3x8xf32>
    %18 = arith.subf %15, %17 : vector<2x3x8xf32>
    %19 = arith.subf %18, %13 : vector<2x3x8xf32>
    %cst_8 = arith.constant 1.000000e+00 : f32
    %20 = vector.broadcast %cst_8 : f32 to vector<2x3x8xf32>
    %21 = arith.subf %20, %9 : vector<2x3x8xf32>
    %22 = arith.select %4, %21, %9 : vector<2x3x8xi1>, vector<2x3x8xf32>
    %23 = arith.mulf %22, %22 : vector<2x3x8xf32>
    %cst_9 = arith.constant 2.500000e-01 : f32
    %cst_10 = arith.constant 7.500000e-01 : f32
    %24 = vector.broadcast %cst_9 : f32 to vector<2x3x8xf32>
    %25 = vector.broadcast %cst_10 : f32 to vector<2x3x8xf32>
    %26 = arith.select %4, %24, %25 : vector<2x3x8xi1>, vector<2x3x8xf32>
    %27 = arith.mulf %26, %19 : vector<2x3x8xf32>
    %28 = arith.mulf %27, %23 : vector<2x3x8xf32>
    %cst_11 = arith.constant dense<0.000000e+00> : vector<2x3xf32>
    %29 = vector.multi_reduction <add>, %28, %cst_11 [2] : vector<2x3x8xf32> to vector<2x3xf32>
    %30 = vector.shape_cast %29 : vector<2x3xf32> to vector<2x3x1xf32>
    %cst_12 = arith.constant dense<0.000000e+00> : vector<2x1xf32>
    %31 = vector.multi_reduction <add>, %30, %cst_12 [1] : vector<2x3x1xf32> to vector<2x1xf32>
    %32 = vector.shape_cast %31 : vector<2x1xf32> to vector<2x1x1xf32>
    %cst_13 = arith.constant dense<0.000000e+00> : vector<1x1xf32>
    %33 = vector.multi_reduction <add>, %32, %cst_13 [0] : vector<2x1x1xf32> to vector<1x1xf32>
    %34 = vector.shape_cast %33 : vector<1x1xf32> to vector<1x1x1xf32>
    %35 = vector.shape_cast %34 : vector<1x1x1xf32> to vector<1x1x1x1xf32>
    %c0_14 = arith.constant 0 : index
    %c0_15 = arith.constant 0 : index
    %c0_16 = arith.constant 0 : index
    %c0_17 = arith.constant 0 : index
    %36 = vector.load %arg4[%c0_14, %c0_15, %c0_16, %c0_17] : memref<1x1x1x1xf32, #tpu.memory_space<vmem>>, vector<1x1x1x1xf32>
    tpu.vector_store %arg4[%c0_14, %c0_15, %c0_16, %c0_17], %35 {strides = array<i32>} : memref<1x1x1x1xf32, #tpu.memory_space<vmem>>, vector<1x1x1x1xf32>,
    %c2_i32 = arith.constant 2 : i32
    %37 = vector.broadcast %c2_i32 : i32 to vector<2x3x8xi32>
    %38 = arith.cmpi slt, %2, %37 : vector<2x3x8xi32>
    %cst_18 = arith.constant -1.000000e+30 : f32
    %39 = vector.broadcast %cst_18 : f32 to vector<2x3x8xf32>
    %40 = arith.select %38, %0, %39 : vector<2x3x8xi1>, vector<2x3x8xf32>
    %cst_19 = arith.constant dense<0xFF800000> : vector<2x8xf32>
    %41 = vector.multi_reduction <maximumf>, %40, %cst_19 [1] : vector<2x3x8xf32> to vector<2x8xf32>
    %42 = vector.extract_strided_slice %0 {offsets = [0, 2, 0], sizes = [2, 1, 8], strides = [1, 1, 1]} : vector<2x3x8xf32> to vector<2x1x8xf32>
    %43 = vector.shape_cast %42 : vector<2x1x8xf32> to vector<2x8xf32>
    %44 = arith.cmpf oge, %41, %43 : vector<2x8xf32>
    %45 = arith.extui %44 : vector<2x8xi1> to vector<2x8xi32>
    %46 = arith.sitofp %45 : vector<2x8xi32> to vector<2x8xf32>
    %cst_20 = arith.constant dense<0.000000e+00> : vector<2xf32>
    %47 = vector.multi_reduction <add>, %46, %cst_20 [1] : vector<2x8xf32> to vector<2xf32>
    %48 = vector.shape_cast %47 : vector<2xf32> to vector<2x1xf32>
    %49 = vector.shape_cast %48 : vector<2x1xf32> to vector<1x1x2x1xf32>
    %c0_21 = arith.constant 0 : index
    %c0_22 = arith.constant 0 : index
    %c0_23 = arith.constant 0 : index
    %c0_24 = arith.constant 0 : index
    %50 = vector.load %arg5[%c0_21, %c0_22, %c0_23, %c0_24] : memref<1x1x2x1xf32, #tpu.memory_space<vmem>>, vector<1x1x2x1xf32>
    tpu.vector_store %arg5[%c0_21, %c0_22, %c0_23, %c0_24], %49 {strides = array<i32>} : memref<1x1x2x1xf32, #tpu.memory_space<vmem>>, vector<1x1x2x1xf32>,
    return
  }
  func.func @transform_0(%arg0: i32, %arg1: i32) -> (i32, i32, i32) {
    %c0_i32 = arith.constant 0 : i32
    %c0_i32_0 = arith.constant 0 : i32
    return %arg0, %c0_i32, %arg1 : i32, i32, i32
  }
  func.func @transform_1(%arg0: i32, %arg1: i32) -> (i32, i32, i32) {
    %c0_i32 = arith.constant 0 : i32
    %c0_i32_0 = arith.constant 0 : i32
    return %arg0, %c0_i32, %arg1 : i32, i32, i32
  }
  func.func @transform_2(%arg0: i32, %arg1: i32) -> (i32, i32, i32, i32) {
    %c0_i32 = arith.constant 0 : i32
    %c0_i32_0 = arith.constant 0 : i32
    %c0_i32_1 = arith.constant 0 : i32
    return %arg0, %arg1, %c0_i32, %c0_i32_0 : i32, i32, i32, i32
  }
  func.func @transform_3(%arg0: i32, %arg1: i32) -> (i32, i32, i32, i32) {
    %c0_i32 = arith.constant 0 : i32
    %c0_i32_0 = arith.constant 0 : i32
    %c0_i32_1 = arith.constant 0 : i32
    return %arg0, %arg1, %c0_i32, %c0_i32_0 : i32, i32, i32, i32
  }
}

</mosaic_0001>

<bundles_post_ra>
// kernel: tpu_custom_call.1
= control target key start
LH: loop header
LB: loop body
LE: loop exit
PB: predicated region body
PF: predicated region fallthrough
CT: control target
= control target key end

     0   :  { %v18_v2 = vlaneseq  ;;  %s263_s0 = inlined_call_operand.vmem [shape: f32[2,3,8], index: 0, kind: input, shape index: {}]   ;;  %s264_s1 = inlined_call_operand.vmem [shape: s32[2,1,8], index: 1, kind: input, shape index: {}]   ;;  %s265_s2 = inlined_call_operand.hbm [shape: f32[1,1,1,1], index: 2, kind: output, shape index: {0}]   ;;  %s266_s3 = inlined_call_operand.vmem [shape: f32[1,1,2,1], index: 3, kind: output, shape index: {1}]  }
   0x1   :  { %v14_v0 = vld [vmem:[%s263_s0] sm:$0x7]  ;;  %v220_v1 = vld [vmem:[%s263_s0 + $0x4] sm:$0x7] }
   0x2   :  { %v148_v3 = vmul.f32 -1.442695, %v14_v0  ;;  %v149_v4 = vmul.f32 -1.442695, %v220_v1  ;;  %v223_v5 = vshrl.u32 %v18_v2, 7 }
   0x4   :  { %155 = vpow2.f32 %v148_v3 }
   0x5   :  { %9 = vsyncpa [#allocation3], 0  ;;  %157 = vpow2.f32 %v149_v4  ;;  %vm93_vm0 = vcmp.lt.s32.totalorder %v223_v5, 2  ;;  %vm68_vm1 = vcmask 59392   ;;  %v191_v26 = vmov 0.0   ;;  %s193_s20 = smov [#allocation2]  }
   0x6   :  { %v94_v6 = vsel %vm93_vm0, %v14_v0, -1e+30  ;;  %v95_v7 = vsel %vm93_vm0, %v220_v1, -1e+30  ;;  %vm119_vm4 = vcmask 1043459   ;;  %vm122_vm5 = vcmask 60418  }
   0x7   :  { %v96_v8 = vsel %vm68_vm1, %v94_v6, -inf  ;;  %v103_v9 = vsel %vm68_vm1, %v95_v7, -inf  ;;  %v146_v38 = vld [vmem:[%s264_s1] ss:$0 sm:$0xff]  ;;  %v147_v39 = vld [vmem:[%s264_s1 + $0x1] ss:$0 sm:$0xff] }
   0x8   :  { %v97_v10 = vrot.slane %v96_v8, 4  ;;  %v104_v11 = vrot.slane %v103_v9, 4  ;;  %vm28_vm6 = vcmp.eq.s32.totalorder %v223_v5, %v146_v38  ;;  %vm29_vm7 = vcmp.eq.s32.totalorder %v223_v5, %v147_v39  ;;  %s134_s21 = sshll.u32 %s193_s20, 4  ;;  %s135_s21 = int_to_ptr.vmem [resolvable:$true] %s134_s21 }
   0x9   :  { %v50_v40 = vmax.f32 %v14_v0, 0.0  ;;  %v52_v41 = vsel %vm28_vm6, %v14_v0, 0.0  ;;  %v51_v42 = vmax.f32 %v220_v1, 0.0  ;;  %v53_v43 = vsel %vm29_vm7, %v220_v1, 0.0  ;;  %s171_s22 = scalar_lea.vmem %s135_s21, 32  ;;  %p172_p1 = scmp.lt.s32.totalorder %s135_s21, %s135_s21 }
   0xa   :  { %v98_v12 = vmax.f32 %v96_v8, %v97_v10  ;;  %v105_v13 = vmax.f32 %v103_v9, %v104_v11  ;;  %v192_v51 = vmov 0.75   ;;  %vm126_vm8 = vcmask 3074  }
   0xb   :  { %v54_v44 = vsub.f32 %v50_v40, %v52_v41  ;;  %v55_v47 = vsub.f32 %v51_v42, %v53_v43  ;;  %v62_v52 = vsel %vm28_vm6, 0.25, %v192_v51  ;;  %v63_v56 = vsel %vm29_vm7, 0.25, %v192_v51 }
   0xc   :  { %v106_v14 = vrot.slane %v105_v13, 2  ;;  %v99_v15 = vrot.slane %v98_v12, 2  ;;  %vm75_vm9 = vcmask 1042432   ;;  %vm91_vm10 = vcmask 0  }
   0xe   :  { %v156_v16 = vpop.eup %155  ;;  %v100_v17 = vmax.f32 %v98_v12, %v99_v15  ;;  %v107_v18 = vmax.f32 %v105_v13, %v106_v14 }
   0xf   :  { %v158_v19 = vpop.eup %157  ;;  %v36_v20 = vadd.f32 1.0, %v156_v16 }
  0x10   :  { %v37_v21 = vadd.f32 1.0, %v158_v19  ;;  %v101_v22 = vrot.slane %v100_v17, 1  ;;  %v108_v23 = vrot.slane %v107_v18, 1 }
  0x11   :  { %159 = vrcp.f32 %v36_v20 }
  0x12   :  { %161 = vrcp.f32 %v37_v21  ;;  %v102_v24 = vmax.f32 %v100_v17, %v101_v22  ;;  %v109_v25 = vmax.f32 %v107_v18, %v108_v23 }
  0x14   :  { %vm110_vm2 = vcmp.ge.f32.partialorder %v102_v24, %v14_v0  ;;  %vm111_vm3 = vcmp.ge.f32.partialorder %v109_v25, %v220_v1 }
  0x15   :  { %v150_v27 = vsel %vm110_vm2, 1.0, %v191_v26  ;;  %v151_v28 = vsel %vm111_vm3, 1.0, %v191_v26 }
  0x16   :  { %v118_v29 = vrot.slane %v151_v28, 7 }
  0x18   :  { %v120_v30 = vsel %vm119_vm4, %v118_v29, %v150_v27 }
  0x19   :  { %v123_v31 = vsel %vm122_vm5, %v120_v30, 0.0 }
  0x1a   :  { %124 = vadd.xlane.f32.xlu1 %v123_v31 }
  0x1b   :  { %v160_v32 = vpop.eup %159 }
  0x1c   :  { %v162_v33 = vpop.eup %161  ;;  %v42_v34 = vsub.f32 1.0, %v160_v32 }
  0x1d   :  { %v43_v35 = vsub.f32 1.0, %v162_v33 }
  0x1e   :  { %v44_v36 = vmax.f32 %v160_v32, %v42_v34  ;;  %v58_v46 = vsel %vm28_vm6, %v42_v34, %v160_v32 }
  0x1f   :  { %v45_v37 = vmax.f32 %v162_v33, %v43_v35  ;;  %v59_v50 = vsel %vm29_vm7, %v43_v35, %v162_v33  ;;  %v60_v55 = vmul.f32 %v58_v46, %v58_v46 }
  0x20   :  { %163 = vlog2.f32 %v44_v36  ;;  %v61_v58 = vmul.f32 %v59_v50, %v59_v50 }
  0x21   :  { %165 = vlog2.f32 %v45_v37 }
  0x2a   :  { %v164_v45 = vpop.eup %163 }
  0x2b   :  { %v166_v48 = vpop.eup %165  ;;  %v47_v49 = vmul.f32 0.6931472, %v164_v45 }
  0x2c   :  { %v49_v53 = vmul.f32 0.6931472, %v166_v48 }
  0x2d   :  { %v56_v54 = vsub.f32 %v54_v44, %v47_v49 }
  0x2e   :  { %v57_v57 = vsub.f32 %v55_v47, %v49_v53 }
  0x2f   :  { %v64_v59 = vmul.f32 %v62_v52, %v56_v54 }
  0x30   :  { %v65_v60 = vmul.f32 %v63_v56, %v57_v57 }
  0x31   :  { %v66_v61 = vmul.f32 %v64_v59, %v60_v55 }
  0x32   :  { %v67_v62 = vmul.f32 %v65_v60, %v61_v58 }
  0x33   :  { %v69_v63 = vsel %vm68_vm1, %v66_v61, 0.0 }
  0x34   :  { %70 = vadd.xlane.f32.xlu0 %v69_v63  ;;  %v72_v0 = vsel %vm68_vm1, %v67_v62, 0.0 }
  0x38   :  { %73 = vadd.xlane.f32.xlu0 %v72_v0 }
  0xa7   :  { %v125_v1 = vpop.xlane.xlu1 %124 }
  0xa8   :  { %127 = vst.msk [vmem:[%s266_s3 - $0x2] sm:$0xc] %vm126_vm8, %v125_v1  ;;  %s167_s3 = scalar_lea.vmem %s135_s21, 16 }
  0xa9   :  { %p168_p0 = scmp.ne.s32.totalorder %s135_s21, %s167_s3  ;;  %p173_p2 = scmp.lt.s32.totalorder %s171_s22, %s167_s3 }
  0xab   :  { %p174_p3 = por %p173_p2, %p172_p1 }
  0xad   :  { %p175_p4 = pnand %p174_p3, %p168_p0 }
  0xc1   :  { %v71_v2 = vpop.xlane.xlu0 %70 }
  0xc2   :  { %v76_v3 = vsel %vm75_vm9, %v71_v2, 0.0 }
  0xc3   :  { %v77_v4 = vrot.slane %v76_v3, 4 }
  0xc5   :  { %v78_v5 = vadd.f32 %v77_v4, %v76_v3  ;;  %v74_v6 = vpop.xlane.xlu0 %73 }
  0xc6   :  { %v83_v7 = vsel %vm75_vm9, %v74_v6, 0.0 }
  0xc7   :  { %v79_v8 = vrot.slane %v78_v5, 2  ;;  %v84_v9 = vrot.slane %v83_v7, 4 }
  0xc9   :  { %v80_v10 = vadd.f32 %v79_v8, %v78_v5  ;;  %v85_v11 = vadd.f32 %v84_v9, %v83_v7 }
  0xcb   :  { %v86_v12 = vrot.slane %v85_v11, 2  ;;  %v81_v13 = vrot.slane %v80_v10, 1 }
  0xcd   :  { %v87_v14 = vadd.f32 %v86_v12, %v85_v11  ;;  %v82_v16 = vadd.f32 %v81_v13, %v80_v10 }
  0xcf   :  { %v88_v15 = vrot.slane %v87_v14, 1 }
  0xd1   :  { %v89_v17 = vadd.f32 %v88_v15, %v87_v14 }
  0xd3   :  { %v90_v18 = vadd.f32 %v89_v17, %v82_v16 }
  0xd5   :  { %92 = vst.msk [vmem:[#allocation2] sm:$0x1] %vm91_vm10, %v90_v18 }
  0xd6   :  { %178 = shalt.err (!%p175_p4)
}
  0xd7   :  { %s179_s25 = scalar_lea.hbm %s265_s2, 16 }
  0xd8   :  { %p180_p5 = scmp.ne.s32.totalorder %s265_s2, %s179_s25  ;;  %p183_p6 = scmp.lt.u32.totalorder %s179_s25, %s265_s2 }
  0xda   :  { %p185_p7 = pnand %p183_p6, %p180_p5 }
  0xdc   :  { %188 = shalt.err (!%p185_p7)
}
  0xdd   :  { %137 = dma.vmem_to_hbm [thread:$0]  %s135_s21, 16, %s265_s2, [#allocation3]  }
  0xde   :  { %189 = dma.done.wait [#allocation3], 16  }
  0xdf   :  { %190 = vsyncadd [#allocation3], 4294967280 }
  0xe0   :  { %145 = vsyncpa [#allocation3], 1 }

</bundles_post_ra>
